<compile_context>
chip_gen: v7x
topology: tpu7x:2x2x1
jax: 0.10.0
libtpu: 0.0.40
codegen_flags: <defaults>
</compile_context>

<pallas_src>
import functools

import jax
import jax.numpy as jnp
from jax.experimental import pallas as pl
from jax.experimental.pallas import tpu as pltpu


# -----------------------------------------------------------------------------
# Kernels (transposed, lane-dense layout: logits live as (M*L, TB) with the
# 128-wide lane axis carrying the batch).
# -----------------------------------------------------------------------------
def _proba_kernel(x_ref, w_ref, b_ref, s_ref, o_ref, z_acc, *, inv_m, matmul_dtype):
    # x_ref: (TB, TK) f32 (cast to matmul_dtype in-kernel, hides under MXU)
    # w_ref: (ML, TK) matmul_dtype   b_ref: (ML, 1) f32   s_ref: (L, ML) f32
    # o_ref: (L, TB) f32             z_acc: (ML, TB) f32  K-split accumulator
    k = pl.program_id(1)

    @pl.when(k == 0)
    def _():
        z_acc[...] = jnp.zeros_like(z_acc)

    xb = x_ref[...].astype(matmul_dtype)
    z_acc[...] += jax.lax.dot_general(
        w_ref[...], xb,
        dimension_numbers=(((1,), (1,)), ((), ())),     # contract hidden on both
        preferred_element_type=jnp.float32)

    @pl.when(k == pl.num_programs(1) - 1)
    def _():
        z = z_acc[...] + b_ref[...]                     # lane-broadcast bias add
        probs = 0.5 * (1.0 + jnp.tanh(0.5 * z))         # sigmoid via one EUP tanh
        o_ref[...] = (jnp.dot(s_ref[...], probs,
                              preferred_element_type=jnp.float32)
                      * inv_m).astype(o_ref.dtype)      # head mean -> (L, TB)


def _loss_kernel(x_ref, w_ref, b_ref, s_ref, y_ref, o_ref, z_acc, *,
                 inv_bl, matmul_dtype, batch, tb, need_mask):
    # y_ref: (L, TB) f32 plain transposed targets (no M-fold tiling).
    # o_ref: (8, 128) f32 per-batch-tile partial; keeps the batch axis "parallel"
    #        so both v7x TensorCores can split it; the wrapper sums partials.
    i = pl.program_id(0)
    k = pl.program_id(1)

    @pl.when(k == 0)
    def _():
        z_acc[...] = jnp.zeros_like(z_acc)

    xb = x_ref[...].astype(matmul_dtype)
    z_acc[...] += jax.lax.dot_general(
        w_ref[...], xb,
        dimension_numbers=(((1,), (1,)), ((), ())),
        preferred_element_type=jnp.float32)

    @pl.when(k == pl.num_programs(1) - 1)
    def _():
        z = z_acc[...] + b_ref[...]                                    # (ML, TB)
        # Stable BCE-with-logits, y-free part: max(z,0) + log1p(exp(-|z|)).
        pos = jnp.maximum(z, 0.0) + jnp.log1p(jnp.exp(-jnp.abs(z)))
        # sum_m z per label via the unscaled selection matmul -> (L, TB); the
        # y term is then a single small lane-dense multiply.
        zsum = jnp.dot(s_ref[...], z, preferred_element_type=jnp.float32)
        contrib = (jnp.sum(pos, axis=0, keepdims=True)                 # XLU sublane
                   - jnp.sum(zsum * y_ref[...], axis=0, keepdims=True))  # reduces
        if need_mask:                                                  # batch tail
            col = i * tb + jax.lax.broadcasted_iota(jnp.int32, contrib.shape, 1)
            contrib = jnp.where(col < batch, contrib, 0.0)
        o_ref[...] = jnp.zeros_like(o_ref) + jnp.sum(contrib) * inv_bl


# -----------------------------------------------------------------------------
# Tile / VMEM budgeting
# -----------------------------------------------------------------------------
_TK_CANDIDATES = (2048, 1024, 512, 256, 128)
_TB_CANDIDATES = (1024, 512, 256, 128)


def _vmem_budget_bytes():
    """~3/4 of physical VMEM (64 MiB v7x, 128 MiB v5e/v6e), capped at 100 MiB."""
    try:
        cap = int(pltpu.get_tpu_info().vmem_capacity_bytes)
    except Exception:
        cap = 64 * 1024 * 1024            # conservative (v7x-sized) fallback
    return min(cap * 3 // 4, 100 * 1024 * 1024)


def _pick_tiles(B, H, ML, L, mm_itemsize, budget):
    """Prefer the largest batch tile (roofline); K-split hidden to stay in budget."""
    def cost(tb, tk):
        return (2 * ML * tk * mm_itemsize      # resident fused weights (double-buffered)
                + 2 * tb * tk * 4              # f32 x-tile double buffer
                + 4 * ML * tb * 4              # z accumulator + elementwise temps
                + 4 * L * tb * 4               # zsum / y / out blocks
                + (1 << 20))                   # fixed slack
    tk_opts = [H] + [c for c in _TK_CANDIDATES if c < H and H % c == 0]
    tb_opts = [B] if B <= 128 else [t for t in _TB_CANDIDATES if t <= max(B // 2, 128)]
    for tb in tb_opts:                         # shrink K before shrinking the batch tile
        for tk in tk_opts:
            if cost(tb, tk) <= budget:
                return tb, tk
    # TODO(synk): masked K tail for hidden sizes with no 128-multiple divisor.
    return tb_opts[-1], tk_opts[-1]


# -----------------------------------------------------------------------------
# Parameter preparation (done ONCE; reused across steps -> no per-call weight cast)
# -----------------------------------------------------------------------------
def prepare_params(weights, biases, matmul_dtype=jnp.bfloat16):
    """weights: (M, L, H), biases: (M, L) -> fused, pre-cast kernel operands."""
    M, L, H = weights.shape
    ML = M * L
    w2 = jnp.asarray(weights).reshape(ML, H).astype(matmul_dtype)   # heads fused into rows
    b2 = jnp.asarray(biases).reshape(ML, 1).astype(jnp.float32)     # fused bias column
    sel = jnp.tile(jnp.eye(L, dtype=jnp.float32), (1, M))           # (L, ML): sums over heads
    return dict(w2=w2, b2=b2, sel=sel, M=M, L=L, H=H, matmul_dtype=matmul_dtype)


# -----------------------------------------------------------------------------
# Wrappers
# -----------------------------------------------------------------------------
def linear_eval_multiple_proba(x, params):
    """x: (B, H) -> mean over heads of sigmoid(x @ W_m^T + b_m): (B, L) f32."""
    w2, b2, sel = params["w2"], params["b2"], params["sel"]
    M, L, H, mm_dtype = params["M"], params["L"], params["H"], params["matmul_dtype"]
    B = x.shape[0]
    ML = M * L

    budget = _vmem_budget_bytes()
    TB, TK = _pick_tiles(B, H, ML, L, jnp.dtype(mm_dtype).itemsize, budget)
    nb, nk = pl.cdiv(B, TB), pl.cdiv(H, TK)

    out_t = pl.pallas_call(
        functools.partial(_proba_kernel, inv_m=1.0 / M, matmul_dtype=mm_dtype),
        out_shape=jax.ShapeDtypeStruct((L, B), jnp.float32),
        grid_spec=pltpu.PrefetchScalarGridSpec(
            num_scalar_prefetch=0,
            grid=(nb, nk),
            in_specs=[
                pl.BlockSpec((TB, TK), lambda i, k: (i, k)),   # x (f32 in HBM, cast in-kernel)
                pl.BlockSpec((ML, TK), lambda i, k: (0, k)),   # fused weights
                pl.BlockSpec((ML, 1), lambda i, k: (0, 0)),    # fused bias column
                pl.BlockSpec((L, ML), lambda i, k: (0, 0)),    # head-sum selection
            ],
            out_specs=pl.BlockSpec((L, TB), lambda i, k: (0, i)),
            scratch_shapes=[pltpu.VMEM((ML, TB), jnp.float32)],
        ),
        compiler_params=pltpu.CompilerParams(
            dimension_semantics=("parallel", "arbitrary"),
            vmem_limit_bytes=budget,
        ),
    )(x, w2, b2, sel)
    return out_t.T          # (B, L): tiny wrapper transpose of the lane-dense result


def linear_eval_multiple_loss(x, y, params):
    """x: (B, H), y: (B, L) -> sum over heads of BCEWithLogitsLoss(head(x), y): scalar."""
    w2, b2, sel = params["w2"], params["b2"], params["sel"]
    M, L, H, mm_dtype = params["M"], params["L"], params["H"], params["matmul_dtype"]
    B = x.shape[0]
    ML = M * L

    budget = _vmem_budget_bytes()
    TB, TK = _pick_tiles(B, H, ML, L, jnp.dtype(mm_dtype).itemsize, budget)
    nb, nk = pl.cdiv(B, TB), pl.cdiv(H, TK)

    y_t = jnp.asarray(y, dtype=jnp.float32).T     # (L, B): tiny vs the old (B, M*L) tiling
    # inv_bl baked statically: a different B changes input shapes and recompiles anyway.
    kernel = functools.partial(
        _loss_kernel, inv_bl=1.0 / float(B * L), matmul_dtype=mm_dtype,
        batch=B, tb=TB, need_mask=(B % TB != 0))

    partials = pl.pallas_call(
        kernel,
        out_shape=jax.ShapeDtypeStruct((nb * 8, 128), jnp.float32),
        grid_spec=pltpu.PrefetchScalarGridSpec(
            num_scalar_prefetch=0,
            grid=(nb, nk),
            in_specs=[
                pl.BlockSpec((TB, TK), lambda i, k: (i, k)),   # x (f32 in HBM)
                pl.BlockSpec((ML, TK), lambda i, k: (0, k)),   # fused weights
                pl.BlockSpec((ML, 1), lambda i, k: (0, 0)),    # fused bias column
                pl.BlockSpec((L, ML), lambda i, k: (0, 0)),    # head-sum selection
                pl.BlockSpec((L, TB), lambda i, k: (0, i)),    # transposed targets
            ],
            out_specs=pl.BlockSpec((8, 128), lambda i, k: (i, 0)),
            scratch_shapes=[pltpu.VMEM((ML, TB), jnp.float32)],
        ),
        compiler_params=pltpu.CompilerParams(
            dimension_semantics=("parallel", "arbitrary"),
            vmem_limit_bytes=budget,
        ),
    )(x, w2, b2, sel, y_t)
    return jnp.sum(partials[::8, 0])              # sum per-batch-tile partial losses


# -----------------------------------------------------------------------------
# Deterministic parameter init (matches module __init__ shapes)
# -----------------------------------------------------------------------------
def init_params(key, nb_labels, hidden_size, nb_multiple):
    # xavier_uniform_ on each (nb_labels, hidden_size) weight; zero biases.
    bound = (6.0 / (hidden_size + nb_labels)) ** 0.5
    weights = jax.random.uniform(
        key, (nb_multiple, nb_labels, hidden_size),
        minval=-bound, maxval=bound, dtype=jnp.float32)
    biases = jnp.zeros((nb_multiple, nb_labels), dtype=jnp.float32)
    return weights, biases


# -----------------------------------------------------------------------------
# Pure-JAX references
# -----------------------------------------------------------------------------
def _ref_proba(x, weights, biases):
    logits = jnp.einsum("bh,mlh->mbl", x, weights,
                        precision=jax.lax.Precision.HIGHEST) + biases[:, None, :]
    return jnp.mean(jax.nn.sigmoid(logits), axis=0)


def _ref_loss(x, y, weights, biases):
    logits = jnp.einsum("bh,mlh->mbl", x, weights,
                        precision=jax.lax.Precision.HIGHEST) + biases[:, None, :]
    per = (jnp.maximum(logits, 0.0) - logits * y[None]
           + jnp.log1p(jnp.exp(-jnp.abs(logits))))
    return jnp.sum(jnp.mean(per, axis=(1, 2)))


if __name__ == "__main__":
    nb_labels = 4
    hidden_size = 32
    nb_multiple = 5
    batch = 8

    key = jax.random.PRNGKey(0)
    k_w, k_b, k_x, k_y = jax.random.split(key, 4)

    weights, _zero_biases = init_params(k_w, nb_labels, hidden_size, nb_multiple)
    # Small nonzero biases so the fused bias-add path is actually exercised.
    biases = 0.1 * jax.random.normal(k_b, (nb_multiple, nb_labels), dtype=jnp.float32)

    x = jax.random.normal(k_x, (batch, hidden_size), dtype=jnp.float32)
    y = (jax.random.uniform(k_y, (batch, nb_labels)) > 0.5).astype(jnp.float32)

    # --- exact-semantics check (f32 matmul path) -----------------------------
    params_f32 = prepare_params(weights, biases, matmul_dtype=jnp.float32)
    proba_f32 = jax.block_until_ready(linear_eval_multiple_proba(x, params_f32))
    loss_f32 = jax.block_until_ready(linear_eval_multiple_loss(x, y, params_f32))
    assert proba_f32.shape == (batch, nb_labels)
    assert jnp.allclose(proba_f32, _ref_proba(x, weights, biases), atol=1e-5)
    assert jnp.allclose(loss_f32, _ref_loss(x, y, weights, biases), atol=1e-4)

    # --- performance path (bf16 operand stream, f32 accumulation) ------------
    params_bf16 = prepare_params(weights, biases)      # fused + cast ONCE, reused
    proba_bf16 = jax.block_until_ready(linear_eval_multiple_proba(x, params_bf16))
    loss_bf16 = jax.block_until_ready(linear_eval_multiple_loss(x, y, params_bf16))
    xr = x.astype(jnp.bfloat16).astype(jnp.float32)
    wr = weights.astype(jnp.bfloat16).astype(jnp.float32)
    assert jnp.allclose(proba_bf16, _ref_proba(xr, wr, biases), atol=1e-4)
    assert jnp.allclose(loss_bf16, _ref_loss(xr, y, wr, biases), atol=1e-3)

    print("KERNEL_OK")
</pallas_src>

<mosaic_0001>
module attributes {stable_mosaic.version = 11 : i64} {
  func.func @_proba_kernel(%arg0: i32, %arg1: i32, %arg2: memref<8x32xf32, #tpu.memory_space<vmem>>, %arg3: memref<20x32xf32, #tpu.memory_space<vmem>>, %arg4: memref<20x1xf32, #tpu.memory_space<vmem>>, %arg5: memref<4x20xf32, #tpu.memory_space<vmem>>, %arg6: memref<4x8xf32, #tpu.memory_space<vmem>>, %arg7: memref<20x8xf32, #tpu.memory_space<vmem>>) attributes {dimension_semantics = [#tpu.dimension_semantics<parallel>, #tpu.dimension_semantics<arbitrary>], iteration_bounds = array<i64: 1, 1>, scalar_prefetch = 0 : i64, scratch_operands = 1 : i64, tpu.core_type = #tpu.core_type<tc>, window_params = [{transform_indices = @transform_0, window_bounds = array<i64: 8, 32>}, {transform_indices = @transform_1, window_bounds = array<i64: 20, 32>}, {pipeline_mode = #tpu.pipeline_mode<synchronous>, transform_indices = @transform_2, window_bounds = array<i64: 20, 1>}, {pipeline_mode = #tpu.pipeline_mode<synchronous>, transform_indices = @transform_3, window_bounds = array<i64: 4, 20>}, {transform_indices = @transform_4, window_bounds = array<i64: 4, 8>}]} {
    %c0_i32 = arith.constant 0 : i32
    %0 = arith.cmpi eq, %arg1, %c0_i32 : i32
    %1 = arith.extui %0 : i1 to i32
    %c0_i32_0 = arith.constant 0 : i32
    %2 = arith.cmpi ne, %1, %c0_i32_0 : i32
    scf.if %2 {
      %cst_10 = arith.constant 0.000000e+00 : f32
      %12 = vector.broadcast %cst_10 : f32 to vector<20x8xf32>
      %c0_11 = arith.constant 0 : index
      %c0_12 = arith.constant 0 : index
      %13 = vector.load %arg7[%c0_11, %c0_12] : memref<20x8xf32, #tpu.memory_space<vmem>>, vector<20x8xf32>
      tpu.vector_store %arg7[%c0_11, %c0_12], %12 {strides = array<i32>} : memref<20x8xf32, #tpu.memory_space<vmem>>, vector<20x8xf32>,
    } else {
    }
    %c0 = arith.constant 0 : index
    %c0_1 = arith.constant 0 : index
    %3 = vector.load %arg2[%c0, %c0_1] : memref<8x32xf32, #tpu.memory_space<vmem>>, vector<8x32xf32>
    %c0_2 = arith.constant 0 : index
    %c0_3 = arith.constant 0 : index
    %4 = vector.load %arg7[%c0_2, %c0_3] : memref<20x8xf32, #tpu.memory_space<vmem>>, vector<20x8xf32>
    %c0_4 = arith.constant 0 : index
    %c0_5 = arith.constant 0 : index
    %5 = vector.load %arg3[%c0_4, %c0_5] : memref<20x32xf32, #tpu.memory_space<vmem>>, vector<20x32xf32>
    %cst = arith.constant dense<0.000000e+00> : vector<20x8xf32>
    %6 = tpu.matmul %5, %3, %cst {dimension_numbers = #tpu.dot_dimension_numbers<[1], [1], [0], [0], [0, 0, 1, 0], [], []>} : vector<20x32xf32>, vector<8x32xf32>, vector<20x8xf32> -> vector<20x8xf32>
    %7 = arith.addf %4, %6 : vector<20x8xf32>
    %c0_6 = arith.constant 0 : index
    %c0_7 = arith.constant 0 : index
    %8 = vector.load %arg7[%c0_6, %c0_7] : memref<20x8xf32, #tpu.memory_space<vmem>>, vector<20x8xf32>
    tpu.vector_store %arg7[%c0_6, %c0_7], %7 {strides = array<i32>} : memref<20x8xf32, #tpu.memory_space<vmem>>, vector<20x8xf32>,
    %c0_i32_8 = arith.constant 0 : i32
    %9 = arith.cmpi eq, %arg1, %c0_i32_8 : i32
    %10 = arith.extui %9 : i1 to i32
    %c0_i32_9 = arith.constant 0 : i32
    %11 = arith.cmpi ne, %10, %c0_i32_9 : i32
    scf.if %11 {
      %c0_10 = arith.constant 0 : index
      %c0_11 = arith.constant 0 : index
      %12 = vector.load %arg7[%c0_10, %c0_11] : memref<20x8xf32, #tpu.memory_space<vmem>>, vector<20x8xf32>
      %c0_12 = arith.constant 0 : index
      %c0_13 = arith.constant 0 : index
      %13 = vector.load %arg4[%c0_12, %c0_13] : memref<20x1xf32, #tpu.memory_space<vmem>>, vector<20x1xf32>
      %14 = vector.broadcast %13 : vector<20x1xf32> to vector<20x8xf32>
      %15 = arith.addf %12, %14 : vector<20x8xf32>
      %cst_14 = arith.constant 5.000000e-01 : f32
      %16 = vector.broadcast %cst_14 : f32 to vector<20x8xf32>
      %17 = arith.mulf %16, %15 : vector<20x8xf32>
      %18 = math.tanh %17 : vector<20x8xf32>
      %cst_15 = arith.constant 1.000000e+00 : f32
      %19 = vector.broadcast %cst_15 : f32 to vector<20x8xf32>
      %20 = arith.addf %19, %18 : vector<20x8xf32>
      %cst_16 = arith.constant 5.000000e-01 : f32
      %21 = vector.broadcast %cst_16 : f32 to vector<20x8xf32>
      %22 = arith.mulf %21, %20 : vector<20x8xf32>
      %c0_17 = arith.constant 0 : index
      %c0_18 = arith.constant 0 : index
      %23 = vector.load %arg5[%c0_17, %c0_18] : memref<4x20xf32, #tpu.memory_space<vmem>>, vector<4x20xf32>
      %cst_19 = arith.constant dense<0.000000e+00> : vector<4x8xf32>
      %24 = tpu.matmul %23, %22, %cst_19 {dimension_numbers = #tpu.dot_dimension_numbers<[1], [0], [0], [1], [0, 0, 1, 1], [], []>} : vector<4x20xf32>, vector<20x8xf32>, vector<4x8xf32> -> vector<4x8xf32>
      %cst_20 = arith.constant 2.000000e-01 : f32
      %25 = vector.broadcast %cst_20 : f32 to vector<4x8xf32>
      %26 = arith.mulf %24, %25 : vector<4x8xf32>
      %c0_21 = arith.constant 0 : index
      %c0_22 = arith.constant 0 : index
      %27 = vector.load %arg6[%c0_21, %c0_22] : memref<4x8xf32, #tpu.memory_space<vmem>>, vector<4x8xf32>
      tpu.vector_store %arg6[%c0_21, %c0_22], %26 {strides = array<i32>} : memref<4x8xf32, #tpu.memory_space<vmem>>, vector<4x8xf32>,
    } else {
    }
    return
  }
  func.func @transform_0(%arg0: i32, %arg1: i32) -> (i32, i32) {
    %c0_i32 = arith.constant 0 : i32
    return %arg0, %arg1 : i32, i32
  }
  func.func @transform_1(%arg0: i32, %arg1: i32) -> (i32, i32) {
    %c0_i32 = arith.constant 0 : i32
    %c0_i32_0 = arith.constant 0 : i32
    return %c0_i32, %arg1 : i32, i32
  }
  func.func @transform_2(%arg0: i32, %arg1: i32) -> (i32, i32) {
    %c0_i32 = arith.constant 0 : i32
    %c0_i32_0 = arith.constant 0 : i32
    %c0_i32_1 = arith.constant 0 : i32
    return %c0_i32, %c0_i32_0 : i32, i32
  }
  func.func @transform_3(%arg0: i32, %arg1: i32) -> (i32, i32) {
    %c0_i32 = arith.constant 0 : i32
    %c0_i32_0 = arith.constant 0 : i32
    %c0_i32_1 = arith.constant 0 : i32
    return %c0_i32, %c0_i32_0 : i32, i32
  }
  func.func @transform_4(%arg0: i32, %arg1: i32) -> (i32, i32) {
    %c0_i32 = arith.constant 0 : i32
    %c0_i32_0 = arith.constant 0 : i32
    return %c0_i32, %arg0 : i32, i32
  }
}

</mosaic_0001>

<bundles_post_ra>
// kernel: tpu_custom_call.1
= control target key start
LH: loop header
LB: loop body
LE: loop exit
PB: predicated region body
PF: predicated region fallthrough
CT: control target
= control target key end

     0   :  { %9 = vsyncpa [#allocation4], 0  ;;  %s481_s0 = inlined_call_operand.hbm [shape: f32[8,32], index: 0, kind: input, shape index: {}]   ;;  %s482_s1 = inlined_call_operand.vmem [shape: f32[20,32], index: 1, kind: input, shape index: {}]   ;;  %s483_s2 = inlined_call_operand.vmem [shape: f32[20,1], index: 2, kind: input, shape index: {}]   ;;  %s484_s3 = inlined_call_operand.vmem [shape: f32[4,20], index: 3, kind: input, shape index: {}]   ;;  %s485_s4 = inlined_call_operand.hbm [shape: f32[4,8], index: 4, kind: output, shape index: {}]  }
   0x1   :  { %10 = vsyncpa [#allocation5], 0  ;;  %s381_s15 = smov [#allocation3]   ;;  %s333_s19 = scalar_lea.hbm %s481_s0, 128 }
   0x2   :  { %s17_s16 = sshll.u32 %s381_s15, 4  ;;  %p334_p0 = scmp.ne.s32.totalorder %s481_s0, %s333_s19  ;;  %s18_s16 = int_to_ptr.vmem [resolvable:$true] %s17_s16 }
   0x3   :  { %p337_p1 = scmp.lt.u32.totalorder %s333_s19, %s481_s0 }
   0x5   :  { %p339_p2 = pnand %p337_p1, %p334_p0 }
   0x7   :  { %342 = shalt.err (!%p339_p2)
}
   0x8   :  { %s343_s24 = scalar_lea.vmem %s18_s16, 128  ;;  %p348_p4 = scmp.lt.s32.totalorder %s18_s16, %s18_s16 }
   0x9   :  { %p344_p3 = scmp.ne.s32.totalorder %s18_s16, %s343_s24  ;;  %p349_p5 = scmp.lt.s32.totalorder %s343_s24, %s343_s24 }
   0xb   :  { %p350_p6 = por %p349_p5, %p348_p4 }
   0xd   :  { %p351_p7 = pnand %p350_p6, %p344_p3 }
   0xf   :  { %354 = shalt.err (!%p351_p7)
}
  0x10   :  { %20 = dma.hbm_to_vmem [thread:$0]  %s481_s0, 128, %s18_s16, [#allocation4]  }
  0x11   :  { %377 = dma.done.wait [#allocation4], 128  }
  0x12   :  { %378 = vsyncadd [#allocation4], 4294967168  ;;  %v382_v0 = vmov 0.0   ;;  %vm383_vm0 = vmmov 0   ;;  %vm34_vm1 = vcmask 64512   ;;  %v384_v1 = vmov 0  }
  0x13   :  { %296 = vmatprep.subr.mxu0 %v382_v0  ;;  %298 = vmatprep.mubr.msk.f32.mxu0 %vm383_vm0, %v382_v0  ;;  %35 = vst.msk [vmem:[#allocation2] sm:$0xff] %vm34_vm1, %v382_v0  ;;  %36 = vst.msk [vmem:[#allocation2 + $0x8] sm:$0xff] %vm34_vm1, %v382_v0  ;;  %vm46_vm2 = vcmask 261120   ;;  %v39_v2 = vld [vmem:[#allocation3] sm:$0xff]  ;;  %v43_v3 = vld [vmem:[%s482_s1] sm:$0xff]  ;;  %vm37_vm3 = vcmask 60416  }
  0x14   :  { %325 = vset.pattern.permute.xlu0 %v384_v1  ;;  %326 = vset.pattern.permute.xlu1 %v384_v1  ;;  %v153_v4 = vld [vmem:[%s483_s2] sm:$0xff]  ;;  %v155_v5 = vld [vmem:[%s483_s2 + $0x10] sm:$0xf]  ;;  %v154_v6 = vld [vmem:[%s483_s2 + $0x8] sm:$0xff]  ;;  %38 = vst.msk [vmem:[#allocation2 + $0x10] sm:$0xf] %vm37_vm3, %v382_v0 }
  0x15   :  { %313 = vmatprep.mubr.msk.f32.mxu1 %vm383_vm0, %v382_v0  ;;  %297 = vmatpush3.xpose.msk.msra.mxu0 %vm46_vm2, %v39_v2  ;;  %v44_v7 = vld [vmem:[%s482_s1 + $0x8] sm:$0xff]  ;;  %v45_v8 = vld [vmem:[%s482_s1 + $0x10] sm:$0xf]  ;;  %v385_v9 = vmov 0.0|0.0   ;;  %vm191_vm4 = vcmask 1043456   ;;  %vm187_vm5 = vcmask 162816  }
  0x16   :  { %158 = vperm.xlu0 %325, %v153_v4   ;;  %168 = vperm.xlu1 %326, %v155_v5   ;;  %v186_v44 = vld [vmem:[%s484_s3] sm:$0xf]  ;;  %s386_s12 = smov [#allocation6]  }
  0x17   :  { %316 = vmatprep.subr.bf16.mxu1 %v385_v9  ;;  %s273_s13 = sshll.u32 %s386_s12, 4  ;;  %s274_s13 = int_to_ptr.vmem [resolvable:$true] %s273_s13 }
  0x18   :  { %299 = vmatmul.mubr.msk.f32.vlgmr.msra.gmra.mrb[0].mxu0 %vm46_vm2, %v43_v3  ;;  %s355_s14 = scalar_lea.vmem %s274_s13, 64  ;;  %p360_p9 = scmp.lt.s32.totalorder %s274_s13, %s274_s13 }
  0x19   :  { %301 = vmatprep.mubr.msk.f32.mxu0 %vm383_vm0, %v382_v0  ;;  %p356_p8 = scmp.ne.s32.totalorder %s274_s13, %s355_s14  ;;  %p361_p10 = scmp.lt.s32.totalorder %s355_s14, %s355_s14 }
  0x1a   :  { %163 = vperm.xlu0 %325, %v154_v6   ;;  %v40_v10 = vld [vmem:[#allocation2] sm:$0xff]  ;;  %v41_v14 = vld [vmem:[#allocation2 + $0x8] sm:$0xff] }
  0x1b   :  { %v42_v18 = vld [vmem:[#allocation2 + $0x10] sm:$0xf]  ;;  %p362_p11 = por %p361_p10, %p360_p9 }
  0x1c   :  { %302 = vmatmul.mubr.msk.f32.gmra.mrb[2].mxu0 %vm46_vm2, %v44_v7 }
  0x1d   :  { %304 = vmatprep.mubr.msk.f32.mxu0 %vm383_vm0, %v382_v0  ;;  %p363_p12 = pnand %p362_p11, %p356_p8 }
  0x20   :  { %305 = vmatmul.mubr.msk.f32.gmra.mrb[4].mxu0 %vm46_vm2, %v45_v8 }
  0x95   :  { %v159_v19 = vpop.permute.xlu0 %158  ;;  %v169_v29 = vpop.permute.xlu1 %168 }
  0x99   :  { %v164_v26 = vpop.permute.xlu0 %163 }
  0xeb   :  { %v125_v11 = vpop.f32.mrb[0].mxu0 }
  0xec   :  { %v139_v12 = vadd.f32 %v125_v11, %v40_v10  ;;  %v300_v13 = vpop.f32.mrb[1].mxu0 }
  0xee   :  { %143 = vst.msk [vmem:[#allocation2] sm:$0xff] %vm34_vm1, %v139_v12 }
  0xef   :  { %v130_v15 = vpop.f32.mrb[2].mxu0 }
  0xf0   :  { %v140_v16 = vadd.f32 %v130_v15, %v41_v14  ;;  %v303_v17 = vpop.f32.mrb[3].mxu0 }
  0xf2   :  { %144 = vst.msk [vmem:[#allocation2 + $0x8] sm:$0xff] %vm34_vm1, %v140_v16 }
  0xf3   :  { %v135_v20 = vpop.f32.mrb[4].mxu0 }
  0xf4   :  { %v141_v21 = vadd.f32 %v135_v20, %v42_v18  ;;  %v306_v22 = vpop.f32.mrb[5].mxu0 }
  0xf5   :  { %v150_v23 = vld [vmem:[#allocation2] sm:$0xff] }
  0xf6   :  { %v171_v24 = vadd.f32 %v159_v19, %v150_v23  ;;  %146 = vst.msk [vmem:[#allocation2 + $0x10] sm:$0xf] %vm37_vm3, %v141_v21 }
  0xf8   :  { %v174_v25 = vmul.f32 0.5, %v171_v24 }
  0xf9   :  { %v151_v27 = vld [vmem:[#allocation2 + $0x8] sm:$0xff] }
  0xfa   :  { %327 = vtanh.f32 %v174_v25  ;;  %v172_v28 = vadd.f32 %v164_v26, %v151_v27 }
  0xfc   :  { %v175_v30 = vmul.f32 0.5, %v172_v28 }
  0xfd   :  { %v152_v31 = vld [vmem:[#allocation2 + $0x10] sm:$0xf] }
  0xfe   :  { %329 = vtanh.f32 %v175_v30  ;;  %v173_v32 = vadd.f32 %v169_v29, %v152_v31 }
 0x100   :  { %v176_v33 = vmul.f32 0.5, %v173_v32 }
 0x102   :  { %331 = vtanh.f32 %v176_v33 }
 0x104   :  { %v328_v34 = vpop.eup %327 }
 0x105   :  { %v180_v35 = vadd.f32 1.0, %v328_v34 }
 0x107   :  { %v183_v38 = vmul.f32 0.5, %v180_v35 }
 0x108   :  { %v330_v36 = vpop.eup %329 }
 0x109   :  { %v181_v37 = vadd.f32 1.0, %v330_v36 }
 0x10b   :  { %v184_v39 = vmul.f32 0.5, %v181_v37 }
 0x10c   :  { %v332_v40 = vpop.eup %331 }
 0x10d   :  { %v182_v41 = vadd.f32 1.0, %v332_v40  ;;  %v317_v42 = vpack.c.bf16 %v184_v39, %v183_v38 }
 0x10f   :  { %v185_v43 = vmul.f32 0.5, %v182_v41  ;;  %318 = vmatpush3.bf16.msra.mxu1 %v317_v42 }
 0x110   :  { %311 = vmatprep.subr.mxu1 %v382_v0 }
 0x113   :  { %312 = vmatpush3.msk.msra.mxu1 %vm191_vm4, %v185_v43 }
 0x114   :  { %314 = vmatmul.mubr.msk.f32.vlgmr.msra.gmra.mrb[0].mxu1 %vm187_vm5, %v186_v44 }
 0x1e7   :  { %v261_v45 = vpop.f32.mrb[0].mxu1 }
 0x1e8   :  { %v265_v46 = vmul.f32 0.2, %v261_v45  ;;  %v315_v47 = vpop.f32.mrb[1].mxu1 }
 0x1ea   :  { %266 = vst.msk [vmem:[#allocation6] sm:$0xf] %vm37_vm3, %v265_v46 }
 0x1eb   :  { %366 = shalt.err (!%p363_p12)
}
 0x1ec   :  { %s367_s16 = scalar_lea.hbm %s485_s4, 64 }
 0x1ed   :  { %p368_p13 = scmp.ne.s32.totalorder %s485_s4, %s367_s16  ;;  %p371_p0 = scmp.lt.u32.totalorder %s367_s16, %s485_s4 }
 0x1ef   :  { %p373_p1 = pnand %p371_p0, %p368_p13 }
 0x1f1   :  { %376 = shalt.err (!%p373_p1)
}
 0x1f2   :  { %276 = dma.vmem_to_hbm [thread:$0]  %s274_s13, 64, %s485_s4, [#allocation5]  }
 0x1f3   :  { %379 = dma.done.wait [#allocation5], 64  }
 0x1f4   :  { %380 = vsyncadd [#allocation5], 4294967232 }
 0x1f5   :  { %280 = vsyncpa [#allocation4], 1 }
 0x1f6   :  { %281 = vsyncpa [#allocation5], 1 }

</bundles_post_ra>
